<compile_context>
chip_gen: v7x
topology: tpu7x:2x2x1
jax: 0.10.0
libtpu: 0.0.40
codegen_flags: <defaults>
</compile_context>

<pallas_src>
import functools

import jax
import jax.numpy as jnp
from jax import lax
from jax.experimental import pallas as pl
from jax.experimental.pallas import tpu as pltpu


def contnet_kernel(x_ref, packed_ref, w2t_ref, b3_ref, o_ref, *,
                   chunk, matmul_dtype, act_dtype):
    # x_ref:      (1, L)  batch-on-lanes slab (lane-dense)
    # packed_ref: (H, 4)  columns = [w1, b1, b2, w3]  (f32)
    # w2t_ref:    (H, H)  layer-2 weight as (out, in), already in matmul_dtype
    # b3_ref:     (1, 1)  SMEM scalar
    # o_ref:      (1, L)  lane-dense output slab
    L = x_ref.shape[1]
    num_chunks = L // chunk

    # Once-per-block loads, hoisted out of the lane-chunk loop.
    w1 = packed_ref[:, 0:1]                                      # (H, 1) f32
    b1 = packed_ref[:, 1:2]                                      # (H, 1) f32
    b2 = packed_ref[:, 2:3]                                      # (H, 1) f32
    w3 = packed_ref[:, 3:4].astype(act_dtype)                    # (H, 1)
    w2t = w2t_ref[...]                                           # (H, H) matmul_dtype
    b3 = b3_ref[0, 0]                                            # scalar f32 (SMEM)

    def body(t, carry):
        start = pl.multiple_of(t * chunk, chunk)
        xc = x_ref[:, pl.ds(start, chunk)]                       # (1, T) f32

        # Layer 1: Linear(1, H).  K=1 matmul == outer product -> VPU broadcast
        # multiply + bias, computed in f32.
        h1 = jnp.maximum(w1 * xc + b1, 0.0)                      # (H, T) f32

        # Layer 2: Linear(H, H).  The only real contraction -> MXU, bf16 operands by
        # default, f32 accumulation.
        h2 = jnp.dot(w2t, h1.astype(matmul_dtype),
                     preferred_element_type=jnp.float32) + b2    # (H, T) f32
        h2 = jnp.maximum(h2, 0.0).astype(act_dtype)              # (H, T) act_dtype

        # Layer 3: Linear(H, 1).  VPU multiply + sublane reduction (XLU);
        # final accumulation in f32.
        prod = (h2 * w3).astype(jnp.float32)                     # (H, T) f32
        out = jnp.sum(prod, axis=0, keepdims=True) + b3          # (1, T) f32

        o_ref[:, pl.ds(start, chunk)] = out.astype(o_ref.dtype)  # dense lane store
        return carry

    lax.fori_loop(0, num_chunks, body, 0, unroll=True)


def _default_act_dtype():
    """bf16 epilogue activations on chips with a bf16 VPU (v6e/v7x); f32 otherwise."""
    try:
        kind = jax.devices()[0].device_kind.lower()
    except Exception:
        return jnp.float32
    if ("v6" in kind) or ("v7" in kind) or ("7x" in kind):
        return jnp.bfloat16
    return jnp.float32


def contnet_forward(x, params, *, lane_block=8192, lane_chunk=512,
                    matmul_dtype=jnp.bfloat16, act_dtype=None):
    """x: (N, 1) or (N,) float32. Returns (N, 1) float32.

    lane_block:   batch elements per grid step (multiple of 128; 8K-32K sweet spot).
    lane_chunk:   inner vreg-resident sub-tile width (multiple of 128, divides lane_block).
    matmul_dtype: HxH matmul operand dtype (bf16 default, f32 for bit-exactness).
    act_dtype:    epilogue activation dtype; None -> auto (bf16 on v6e/v7x, f32 else).
    """
    H = params["w1"].shape[1]
    L = int(lane_block)
    assert L % 128 == 0, "lane_block must be a multiple of 128"
    chunk = int(min(lane_chunk, L))
    assert chunk % 128 == 0 and L % chunk == 0, "lane_chunk must be a 128-multiple dividing lane_block"
    if act_dtype is None:
        act_dtype = _default_act_dtype()

    xf = jnp.asarray(x, jnp.float32).reshape(-1)
    N = xf.shape[0]

    # Lane-dense re-layout: batch on the lane axis, zero-padded to whole blocks
    # (padded tail is computed but sliced off below).
    num_blocks = max(int(pl.cdiv(N, L)), 1)
    N_pad = num_blocks * L
    x2 = jnp.pad(xf, (0, N_pad - N)).reshape(1, N_pad)

    # Weight re-layout (wrapper-side plumbing, done once).
    w1v = jnp.asarray(params["w1"], jnp.float32).reshape(H)
    b1v = jnp.asarray(params["b1"], jnp.float32).reshape(H)
    b2v = jnp.asarray(params["b2"], jnp.float32).reshape(H)
    w3v = jnp.asarray(params["w3"], jnp.float32).reshape(H)
    packed = jnp.stack([w1v, b1v, b2v, w3v], axis=1)                         # (H, 4)
    w2t = jnp.asarray(params["w2"], jnp.float32).T.astype(matmul_dtype)      # (H, H) = (out, in)
    b3s = jnp.asarray(params["b3"], jnp.float32).reshape(1, 1)               # (1, 1) -> SMEM

    kernel = functools.partial(contnet_kernel, chunk=chunk,
                               matmul_dtype=matmul_dtype, act_dtype=act_dtype)
    const = lambda i: (0, 0)  # constant block index: weights fetched once, reused per step

    out2 = pl.pallas_call(
        kernel,
        out_shape=jax.ShapeDtypeStruct((1, N_pad), jnp.float32),
        grid_spec=pltpu.PrefetchScalarGridSpec(
            num_scalar_prefetch=0,
            grid=(num_blocks,),
            in_specs=[
                pl.BlockSpec((1, L), lambda i: (0, i)),             # x slab (lane-dense)
                pl.BlockSpec((H, 4), const),                        # packed [w1|b1|b2|w3]
                pl.BlockSpec((H, H), const),                        # w2^T (matmul_dtype)
                pl.BlockSpec(memory_space=pltpu.MemorySpace.SMEM),  # b3 scalar in SMEM
            ],
            out_specs=pl.BlockSpec((1, L), lambda i: (0, i)),
        ),
        compiler_params=pltpu.CompilerParams(
            # Independent batch blocks; on v7x switch to pltpu.CORE_PARALLEL if a
            # profile ever shows one TensorCore idle.
            dimension_semantics=("parallel",),
            # Explicit limit: safe under v5e's 16 MiB / v7x's 32 MiB scoped defaults,
            # with plenty of headroom for the (1, L) in/out double buffers at L<=32K.
            vmem_limit_bytes=32 * 1024 * 1024,
        ),
    )(x2, packed, w2t, b3s)

    return out2[0, :N].reshape(N, 1)


def init_params(key, hidden=32):
    """Deterministic init mirroring nn.Linear shapes (weights stored as (in, out))."""
    k1, k2, k3, k4, k5, k6 = jax.random.split(key, 6)

    def uni(k, shape, fan_in):
        bound = 1.0 / jnp.sqrt(jnp.float32(fan_in))
        return jax.random.uniform(k, shape, jnp.float32, -bound, bound)

    return {
        "w1": uni(k1, (1, hidden), 1),
        "b1": uni(k2, (hidden,), 1),
        "w2": uni(k3, (hidden, hidden), hidden),
        "b2": uni(k4, (hidden,), hidden),
        "w3": uni(k5, (hidden, 1), hidden),
        "b3": uni(k6, (1,), hidden),
    }


def reference_forward(x, p):
    h1 = jnp.maximum(x @ p["w1"] + p["b1"], 0.0)
    h2 = jnp.maximum(h1 @ p["w2"] + p["b2"], 0.0)
    return h2 @ p["w3"] + p["b3"]


if __name__ == "__main__":
    key = jax.random.PRNGKey(0)
    kx, kp = jax.random.split(key)

    hidden = 32
    N = 4000  # deliberately not a multiple of the lane block; wrapper pads & slices
    x = jax.random.normal(kx, (N, 1), jnp.float32)
    params = init_params(kp, hidden=hidden)
    ref = reference_forward(x, params)

    # Strict f32 path (exercises multi-block grid + inner chunk loop; bit-accurate vs JAX).
    out_f32 = contnet_forward(x, params, lane_block=1024, lane_chunk=512,
                              matmul_dtype=jnp.float32, act_dtype=jnp.float32)
    out_f32 = jax.block_until_ready(out_f32)
    assert out_f32.shape == (N, 1)
    assert jnp.allclose(out_f32, ref, atol=1e-5, rtol=1e-5), "Pallas f32 output mismatch vs reference"

    # Default performance path: bf16 MXU operands, lane_block=8192, auto activation dtype.
    out_fast = contnet_forward(x, params)
    out_fast = jax.block_until_ready(out_fast)
    assert out_fast.shape == (N, 1)
    assert float(jnp.max(jnp.abs(out_fast - ref))) < 0.2, "Pallas bf16 path deviates too far"

    print("KERNEL_OK")
</pallas_src>

<mosaic_0001>
module attributes {stable_mosaic.version = 11 : i64} {
  func.func @contnet_kernel(%arg0: i32, %arg1: memref<1x1024xf32, #tpu.memory_space<vmem>>, %arg2: memref<32x4xf32, #tpu.memory_space<vmem>>, %arg3: memref<32x32xf32, #tpu.memory_space<vmem>>, %arg4: memref<1x1xf32, #tpu.memory_space<smem>>, %arg5: memref<1x1024xf32, #tpu.memory_space<vmem>>) attributes {dimension_semantics = [#tpu.dimension_semantics<parallel>], iteration_bounds = array<i64: 4>, scalar_prefetch = 0 : i64, scratch_operands = 0 : i64, tpu.core_type = #tpu.core_type<tc>, window_params = [{transform_indices = @transform_0, window_bounds = array<i64: 1, 1024>}, {pipeline_mode = #tpu.pipeline_mode<synchronous>, transform_indices = @transform_1, window_bounds = array<i64: 32, 4>}, {pipeline_mode = #tpu.pipeline_mode<synchronous>, transform_indices = @transform_2, window_bounds = array<i64: 32, 32>}, {transform_indices = @transform_3, window_bounds = array<i64: 1, 1>}, {transform_indices = @transform_4, window_bounds = array<i64: 1, 1024>}]} {
    %c0 = arith.constant 0 : index
    %c0_0 = arith.constant 0 : index
    %0 = vector.load %arg2[%c0, %c0_0] : memref<32x4xf32, #tpu.memory_space<vmem>>, vector<32x1xf32>
    %c0_1 = arith.constant 0 : index
    %c1 = arith.constant 1 : index
    %1 = vector.load %arg2[%c0_1, %c1] : memref<32x4xf32, #tpu.memory_space<vmem>>, vector<32x1xf32>
    %c0_2 = arith.constant 0 : index
    %c2 = arith.constant 2 : index
    %2 = vector.load %arg2[%c0_2, %c2] : memref<32x4xf32, #tpu.memory_space<vmem>>, vector<32x1xf32>
    %c0_3 = arith.constant 0 : index
    %c3 = arith.constant 3 : index
    %3 = vector.load %arg2[%c0_3, %c3] : memref<32x4xf32, #tpu.memory_space<vmem>>, vector<32x1xf32>
    %c0_4 = arith.constant 0 : index
    %c0_5 = arith.constant 0 : index
    %4 = vector.load %arg3[%c0_4, %c0_5] : memref<32x32xf32, #tpu.memory_space<vmem>>, vector<32x32xf32>
    %c0_6 = arith.constant 0 : index
    %c0_7 = arith.constant 0 : index
    %5 = memref.load %arg4[%c0_6, %c0_7] : memref<1x1xf32, #tpu.memory_space<smem>>
    %c0_i32 = arith.constant 0 : i32
    %c512_i32 = arith.constant 512 : i32
    %6 = arith.muli %c0_i32, %c512_i32 : i32
    %7 = tpu.assume_multiple %6, 512 : i32
    %c0_8 = arith.constant 0 : index
    %8 = arith.index_cast %7 : i32 to index
    %9 = vector.load %arg1[%c0_8, %8] : memref<1x1024xf32, #tpu.memory_space<vmem>>, vector<1x512xf32>
    %10 = vector.broadcast %0 : vector<32x1xf32> to vector<32x512xf32>
    %11 = vector.broadcast %9 : vector<1x512xf32> to vector<32x512xf32>
    %12 = arith.mulf %10, %11 : vector<32x512xf32>
    %13 = vector.broadcast %1 : vector<32x1xf32> to vector<32x512xf32>
    %14 = arith.addf %12, %13 : vector<32x512xf32>
    %cst = arith.constant 0.000000e+00 : f32
    %15 = vector.broadcast %cst : f32 to vector<32x512xf32>
    %16 = arith.maximumf %14, %15 : vector<32x512xf32>
    %cst_9 = arith.constant dense<0.000000e+00> : vector<32x512xf32>
    %17 = tpu.matmul %4, %16, %cst_9 {dimension_numbers = #tpu.dot_dimension_numbers<[1], [0], [0], [1], [0, 0, 1, 1], [], []>} : vector<32x32xf32>, vector<32x512xf32>, vector<32x512xf32> -> vector<32x512xf32>
    %18 = vector.broadcast %2 : vector<32x1xf32> to vector<32x512xf32>
    %19 = arith.addf %17, %18 : vector<32x512xf32>
    %cst_10 = arith.constant 0.000000e+00 : f32
    %20 = vector.broadcast %cst_10 : f32 to vector<32x512xf32>
    %21 = arith.maximumf %19, %20 : vector<32x512xf32>
    %22 = vector.broadcast %3 : vector<32x1xf32> to vector<32x512xf32>
    %23 = arith.mulf %21, %22 : vector<32x512xf32>
    %cst_11 = arith.constant dense<0.000000e+00> : vector<512xf32>
    %24 = vector.multi_reduction <add>, %23, %cst_11 [0] : vector<32x512xf32> to vector<512xf32>
    %25 = vector.shape_cast %24 : vector<512xf32> to vector<1x512xf32>
    %26 = vector.broadcast %5 : f32 to vector<1x512xf32>
    %27 = arith.addf %25, %26 : vector<1x512xf32>
    %c0_12 = arith.constant 0 : index
    %28 = arith.index_cast %7 : i32 to index
    %29 = vector.load %arg5[%c0_12, %28] : memref<1x1024xf32, #tpu.memory_space<vmem>>, vector<1x512xf32>
    tpu.vector_store %arg5[%c0_12, %28], %27 {strides = array<i32>} : memref<1x1024xf32, #tpu.memory_space<vmem>>, vector<1x512xf32>,
    %c1_i32 = arith.constant 1 : i32
    %c512_i32_13 = arith.constant 512 : i32
    %30 = arith.muli %c1_i32, %c512_i32_13 : i32
    %31 = tpu.assume_multiple %30, 512 : i32
    %c0_14 = arith.constant 0 : index
    %32 = arith.index_cast %31 : i32 to index
    %33 = vector.load %arg1[%c0_14, %32] : memref<1x1024xf32, #tpu.memory_space<vmem>>, vector<1x512xf32>
    %34 = vector.broadcast %0 : vector<32x1xf32> to vector<32x512xf32>
    %35 = vector.broadcast %33 : vector<1x512xf32> to vector<32x512xf32>
    %36 = arith.mulf %34, %35 : vector<32x512xf32>
    %37 = vector.broadcast %1 : vector<32x1xf32> to vector<32x512xf32>
    %38 = arith.addf %36, %37 : vector<32x512xf32>
    %cst_15 = arith.constant 0.000000e+00 : f32
    %39 = vector.broadcast %cst_15 : f32 to vector<32x512xf32>
    %40 = arith.maximumf %38, %39 : vector<32x512xf32>
    %cst_16 = arith.constant dense<0.000000e+00> : vector<32x512xf32>
    %41 = tpu.matmul %4, %40, %cst_16 {dimension_numbers = #tpu.dot_dimension_numbers<[1], [0], [0], [1], [0, 0, 1, 1], [], []>} : vector<32x32xf32>, vector<32x512xf32>, vector<32x512xf32> -> vector<32x512xf32>
    %42 = vector.broadcast %2 : vector<32x1xf32> to vector<32x512xf32>
    %43 = arith.addf %41, %42 : vector<32x512xf32>
    %cst_17 = arith.constant 0.000000e+00 : f32
    %44 = vector.broadcast %cst_17 : f32 to vector<32x512xf32>
    %45 = arith.maximumf %43, %44 : vector<32x512xf32>
    %46 = vector.broadcast %3 : vector<32x1xf32> to vector<32x512xf32>
    %47 = arith.mulf %45, %46 : vector<32x512xf32>
    %cst_18 = arith.constant dense<0.000000e+00> : vector<512xf32>
    %48 = vector.multi_reduction <add>, %47, %cst_18 [0] : vector<32x512xf32> to vector<512xf32>
    %49 = vector.shape_cast %48 : vector<512xf32> to vector<1x512xf32>
    %50 = vector.broadcast %5 : f32 to vector<1x512xf32>
    %51 = arith.addf %49, %50 : vector<1x512xf32>
    %c0_19 = arith.constant 0 : index
    %52 = arith.index_cast %31 : i32 to index
    %53 = vector.load %arg5[%c0_19, %52] : memref<1x1024xf32, #tpu.memory_space<vmem>>, vector<1x512xf32>
    tpu.vector_store %arg5[%c0_19, %52], %51 {strides = array<i32>} : memref<1x1024xf32, #tpu.memory_space<vmem>>, vector<1x512xf32>,
    %c2_i32 = arith.constant 2 : i32
    return
  }
  func.func @transform_0(%arg0: i32) -> (i32, i32) {
    %c0_i32 = arith.constant 0 : i32
    %c0_i32_0 = arith.constant 0 : i32
    return %c0_i32, %arg0 : i32, i32
  }
  func.func @transform_1(%arg0: i32) -> (i32, i32) {
    %c0_i32 = arith.constant 0 : i32
    %c0_i32_0 = arith.constant 0 : i32
    %c0_i32_1 = arith.constant 0 : i32
    return %c0_i32, %c0_i32_0 : i32, i32
  }
  func.func @transform_2(%arg0: i32) -> (i32, i32) {
    %c0_i32 = arith.constant 0 : i32
    %c0_i32_0 = arith.constant 0 : i32
    %c0_i32_1 = arith.constant 0 : i32
    return %c0_i32, %c0_i32_0 : i32, i32
  }
  func.func @transform_3(%arg0: i32) -> (i32, i32) {
    %c0_i32 = arith.constant 0 : i32
    %c0_i32_0 = arith.constant 0 : i32
    %c0_i32_1 = arith.constant 0 : i32
    return %c0_i32, %c0_i32_0 : i32, i32
  }
  func.func @transform_4(%arg0: i32) -> (i32, i32) {
    %c0_i32 = arith.constant 0 : i32
    %c0_i32_0 = arith.constant 0 : i32
    return %c0_i32, %arg0 : i32, i32
  }
}

</mosaic_0001>

<bundles_post_ra>
// kernel: tpu_custom_call.1
= control target key start
LH: loop header
LB: loop body
LE: loop exit
PB: predicated region body
PF: predicated region fallthrough
CT: control target
= control target key end

     0   :  { %s1750_s0 = inlined_call_operand.vmem [shape: f32[1,4096], index: 0, kind: input, shape index: {}]   ;;  %s1751_s1 = inlined_call_operand.vmem [shape: f32[32,4], index: 1, kind: input, shape index: {}]   ;;  %s1752_s2 = inlined_call_operand.hbm [shape: f32[32,32], index: 2, kind: input, shape index: {}]   ;;  %s1753_s3 = inlined_call_operand.<no memory space> [shape: f32[1,1], index: 3, kind: input, shape index: {}]   ;;  %s1754_s4 = inlined_call_operand.hbm [shape: f32[1,4096], index: 4, kind: output, shape index: {}]  }
   0x1   :  { %9 = sst [smem:[#allocation2]] %s1753_s3 }
   0x2   :  { %10 = vsyncpa [#allocation4], 0 }
   0x3   :  { %11 = vsyncpa [#allocation5], 0 }
   0x4   :  { %13 = vsyncpa [#allocation5 + $0x1], 0  ;;  %s1357_s17 = smov 0   ;;  %s1359_s18 = smov 0  }
   0x5   :  { %s1361_s19 = smov 0   ;;  %s1363_s20 = smov 0  }
   0x6 LB: > { %s1378_s3 = sadd.s32 4294967295, %s1317_s20   ;;  %s1092_s21 = sadd.s32 4294967294, %s1317_s20   ;;  %s1317_s20 = sphi %s1363_s20, %s1772_s20   ;;  %s1313_s19 = sphi %s1361_s19, %s1771_s19   ;;  %s1309_s18 = sphi %s1359_s18, %s1770_s18   ;;  %s1305_s17 = sphi %s1357_s17, %s1769_s17  }
   0x7   : > { %s1382_s22 = sadd.s32 1, %s1317_s20   ;;  %s115_s23 = sadd.s32 1, %s1313_s19 }
   0x8   : > { %s112_s24 = ssub.s32 %s1317_s20, %s1382_s22  ;;  %p125_p0 = scmp.ne.s32.totalorder %s1313_s19, %s1309_s18 }
   0x9   : > { %p113_p1 = scmp.eq.s32.totalorder %s112_s24, 0  ;;  %p126_p2 = scmp.eq.s32.totalorder %s1378_s3, 3 }
   0xa   : > { %p131_p3 = scmp.ne.s32.totalorder %s1309_s18, %s1305_s17  ;;  %p132_p4 = scmp.eq.s32.totalorder %s1092_s21, 3 }
   0xb   : > { %s1393_s25 = scalar_select %p113_p1, %s1313_s19, %s115_s23  }
   0xc   : > { %p1395_p5 = por %p126_p2, %p125_p0  ;;  %p1399_p6 = por %p132_p4, %p131_p3 }
   0xd   : > { %p1093_p7 = scmp.ge.s32.totalorder %s1317_s20, 1  ;;  %p139_p8 = scmp.lt.s32.totalorder %s1317_s20, 5 }
   0xe   : > { %s1758_s26 = scalar_select %p1395_p5, 1, 0 }
   0xf   : > { %s1759_s27 = scalar_select %p1399_p6, 1, 0 }
  0x10   : > { %p1755_p9 = scmp.eq.s32.totalorder %s1378_s3, 0  ;;  %p1406_p10 = pnand %p1093_p7, %p139_p8 }
  0x11   : > { %s1319_s29 = smov [#allocation3]   ;;  %s1223_s8 = scalar_lea.hbm %s1752_s2, 512 }
  0x12   : > { %s1760_s28 = scalar_select %p1406_p10, 1, 0 }
  0x13   : > { %s154_s30 = sshll.u32 %s1319_s29, 4  ;;  %p1162_p11 = pneg %p1406_p10  ;;  %s155_s30 = int_to_ptr.vmem [resolvable:$true] %s154_s30 }
  0x14   : > { %p1224_p13 = scmp.ne.s32.totalorder %s1752_s2, %s1223_s8  ;;  %p1230_p3 = scmp.lt.u32.totalorder %s1223_s8, %s1752_s2 }
  0x15   : > { %p1414_p12 = pnand %p1755_p9, %p1162_p11 }
  0x17   : > { %p1225_p0 = pneg %p1414_p12 }
  0x19   : > { %p1226_p1 = pnand %p1225_p0, %p1224_p13 }
  0x1b   : > { %p1227_p2 = pneg %p1226_p1 }
  0x1d   : > { %p1232_p4 = pnand %p1230_p3, %p1227_p2 }
  0x1f   : > { %1235 = shalt.err (!%p1232_p4)
}
  0x20   : > { %s1236_s13 = scalar_lea.vmem %s155_s30, 512  ;;  %p1244_p9 = scmp.lt.s32.totalorder %s155_s30, %s155_s30 }
  0x21   : > { %p1237_p7 = scmp.ne.s32.totalorder %s155_s30, %s1236_s13  ;;  %p1245_p6 = scmp.lt.s32.totalorder %s1236_s13, %s1236_s13 }
  0x23   : > { %p1239_p8 = pnand %p1237_p7, %p1225_p0  ;;  %p1246_p5 = por %p1245_p6, %p1244_p9 }
  0x25   : > { %p1240_p11 = pneg %p1239_p8 }
  0x27   : > { %p1247_p10 = pnand %p1246_p5, %p1240_p11 }
  0x29   : > { %1250 = shalt.err (!%p1247_p10)
}
  0x2a   : > { %s1320_s14 = smov 128   ;;  %s1321_s15 = smov 8  }
  0x2b   : > { %1165 = dma.hbm_to_vmem [thread:$0]  (!%p1414_p12), %s1752_s2, 512, %s155_s30, [#allocation4], %s1320_s14, %s1320_s14, %s1321_s15  }
  0x2c   : > { %p1762_p13 = scmp.ne.s32.totalorder %s1760_s28, 0 }
  0x2d   : > { %p1763_p1 = scmp.eq.s32.totalorder (!%p1762_p13), %s1378_s3, 0 }
  0x2e   : > { %181 = sbr.rel (%p1762_p13) target bundleno = 499 (0x1f3), region = 36 }
  0x35   : > { %1296 = dma.done.wait (%p1763_p1), [#allocation4], 512   ;;  %p1764_p0 = pmov %p1763_p1 }
  0x36   : > { %v1322_v0 = vmov 1   ;;  %v1323_v1 = vmov 0   ;;  %v212_v2 = vld [vmem:[%s1751_s1] sm:$0xff]  ;;  %v213_v3 = vld [vmem:[%s1751_s1 + $0x8] sm:$0xff]  ;;  %v214_v4 = vld [vmem:[%s1751_s1 + $0x10] sm:$0xff]  ;;  %v1324_v6 = vmov 0.0   ;;  %v243_v9 = vlaneseq }
  0x37   : > { %1298 = vsyncadd (%p1764_p0), [#allocation4], 4294966784  ;;  %1215 = vset.pattern.permute.xlu1 %v1322_v0  ;;  %1214 = vset.pattern.permute.xlu0 %v1323_v1  ;;  %v215_v5 = vld [vmem:[%s1751_s1 + $0x18] sm:$0xff]  ;;  %v1325_v7 = vmov 2   ;;  %v1326_v8 = vmov 3   ;;  %s1099_s8 = sshll.u32 %s1378_s3, 3 }
  0x38   : > { %280 = vperm.xlu1 %1215, %v212_v2   ;;  %224 = vperm.xlu0 %1214, %v212_v2   ;;  %p207_p5 = scmp.lt.s32.totalorder %s1099_s8, 31  ;;  %v1456_v10 = vshrl.u32 %v243_v9, 7  ;;  %vm343_vm0 = vcmask 261120   ;;  %s220_s12 = sld [smem:[#allocation2]]  ;;  %vm1686_vm1 = vcmp.lt.s32.totalorder %v243_v9, 512 }
  0x39   : > { %420 = vmatprep.mubr.f32.mxu0 %v1324_v6  ;;  %509 = vmatprep.mubr.f32.mxu1 %v1324_v6  ;;  %s203_s13 = sand.u32 1, %s1309_s18   ;;  %s1123_s16 = sshll.u32 %s1378_s3, 7 }
  0x3a   : > { %s1774_s8 = smov (!%p207_p5, %s1099_s8), 31  ;;  %v249_v11 = vsub.s32 1, %v1456_v10  ;;  %v257_v12 = vsub.s32 3, %v1456_v10  ;;  %v245_v13 = vsub.s32 0, %v1456_v10  ;;  %v253_v14 = vsub.s32 2, %v1456_v10  ;;  %s1098_s14 = sshll.u32 %s203_s13, 3 }
  0x3b   : > { %s209_s11 = scalar_lea.vmem %s1750_s0, %s1774_s8  ;;  %s205_s15 = scalar_lea.vmem [#allocation6], %s1098_s14 }
  0x3c   : > { %284 = vperm.xlu1 %1215, %v213_v3   ;;  %229 = vperm.xlu0 %1214, %v213_v3   ;;  %v221_v15 = vld [vmem:[%s209_s11] sm:$0xf]  ;;  %v1108_v16 = vld [vmem:[%s209_s11 + $0x4] sm:$0xf]  ;;  %s1024_s21 = sshll.u32 %s205_s15, 4  ;;  %s1704_s29 = scalar_lea.hbm %s1754_s4, %s1123_s16  ;;  %s1706_s21 = int_to_ptr.vmem [resolvable:$true] %s1024_s21 }
  0x3d   : > { %v250_v17 = vrot.slane %v221_v15, %v249_v11  ;;  %v258_v18 = vrot.slane %v221_v15, %v257_v12  ;;  %v246_v19 = vrot.slane %v221_v15, %v245_v13  ;;  %v254_v20 = vrot.slane %v221_v15, %v253_v14  ;;  %s1010_s30 = scalar_lea.sflag [#allocation5], %s203_s13  ;;  %s1251_s3 = scalar_lea.vmem %s1706_s21, 128 }
  0x3e   : > { %v1465_v21 = vrot.slane %v1108_v16, %v245_v13  ;;  %v1467_v22 = vrot.slane %v1108_v16, %v253_v14  ;;  %v1469_v23 = vrot.slane %v1108_v16, %v249_v11  ;;  %v1471_v24 = vrot.slane %v1108_v16, %v257_v12  ;;  %p1252_p6 = scmp.ne.s32.totalorder %s1706_s21, %s1251_s3  ;;  %p1767_p9 = scmp.ne.s32.totalorder %s1758_s26, 0 }
  0x3f   : > { %s1328_s28 = smov [#allocation6]  }
  0x40   : > { %1216 = vset.pattern.permute.xlu1 %v1323_v1  ;;  %234 = vperm.xlu0 %1214, %v214_v4   ;;  %p1253_p10 = pnand %p1252_p6, %p1767_p9  ;;  %s1255_s5 = sshll.u32 %s1328_s28, 4  ;;  %s1256_s5 = int_to_ptr.vmem [resolvable:$false] %s1255_s5 }
  0x41   : > { %239 = vperm.xlu1 %1216, %v215_v5   ;;  %s1257_s6 = scalar_lea.vmem %s1256_s5, 256  ;;  %p1258_p2 = scmp.lt.s32.totalorder %s1706_s21, %s1256_s5 }
  0x42   : > { %p1254_p12 = pneg %p1253_p10  ;;  %p1259_p3 = scmp.lt.s32.totalorder %s1257_s6, %s1251_s3 }
  0x44   : > { %1217 = vset.pattern.permute.xlu0 %v1322_v0  ;;  %p1260_p4 = por %p1259_p3, %p1258_p2 }
  0x45   : > { %1218 = vset.pattern.permute.xlu1 %v1322_v0  ;;  %288 = vperm.xlu0 %1217, %v214_v4  }
  0x46   : > { %292 = vperm.xlu1 %1218, %v215_v5   ;;  %p1261_p7 = pnand %p1260_p4, %p1254_p12 }
  0x49   : > { %1220 = vset.pattern.permute.xlu0 %v1325_v7 }
  0x4a   : > { %1219 = vset.pattern.permute.xlu1 %v1325_v7  ;;  %332 = vperm.xlu0 %1220, %v213_v3  }
  0x4b   : > { %328 = vperm.xlu1 %1219, %v212_v2  }
  0x4e   : > { %1221 = vset.pattern.permute.xlu0 %v1326_v8 }
  0x4f   : > { %336 = vperm.xlu1 %1219, %v214_v4   ;;  %551 = vperm.xlu0 %1221, %v212_v2  }
  0x53   : > { %340 = vperm.xlu1 %1219, %v215_v5   ;;  %563 = vperm.xlu0 %1221, %v215_v5  }
  0x57   : > { %1222 = vset.pattern.permute.xlu1 %v1326_v8 }
  0x58   : > { %555 = vperm.xlu1 %1222, %v213_v3  }
  0x5c   : > { %559 = vperm.xlu1 %1222, %v214_v4  }
  0xb7   : > { %v281_v25 = vpop.permute.xlu1 %280  ;;  %v225_v26 = vpop.permute.xlu0 %224 }
  0xb8   : > { %v264_v27 = vmul.f32 %v250_v17, %v225_v26  ;;  %v266_v28 = vmul.f32 %v258_v18, %v225_v26  ;;  %v263_v29 = vmul.f32 %v246_v19, %v225_v26  ;;  %v265_v30 = vmul.f32 %v254_v20, %v225_v26 }
  0xb9   : > { %v681_v31 = vmul.f32 %v1469_v23, %v225_v26  ;;  %v683_v32 = vmul.f32 %v1471_v24, %v225_v26  ;;  %v680_v33 = vmul.f32 %v1465_v21, %v225_v26  ;;  %v682_v34 = vmul.f32 %v1467_v22, %v225_v26 }
  0xba   : > { %v296_v35 = vadd.f32 %v281_v25, %v264_v27  ;;  %v298_v36 = vadd.f32 %v281_v25, %v266_v28  ;;  %v295_v37 = vadd.f32 %v281_v25, %v263_v29  ;;  %v297_v38 = vadd.f32 %v281_v25, %v265_v30 }
  0xbb   : > { %v1477_v39 = vpop.permute.xlu1 %284  ;;  %v1479_v40 = vpop.permute.xlu0 %229  ;;  %v1481_v41 = vadd.f32 %v681_v31, %v281_v25  ;;  %v1483_v42 = vadd.f32 %v683_v32, %v281_v25  ;;  %v1485_v43 = vadd.f32 %v680_v33, %v281_v25  ;;  %v1489_v47 = vadd.f32 %v682_v34, %v281_v25 }
  0xbc   : > { %v268_v44 = vmul.f32 %v250_v17, %v1479_v40  ;;  %v312_v45 = vmax.f32 %v296_v35, 0.0  ;;  %v270_v46 = vmul.f32 %v258_v18, %v1479_v40  ;;  %v314_v48 = vmax.f32 %v298_v36, 0.0 }
  0xbd   : > { %v267_v49 = vmul.f32 %v246_v19, %v1479_v40  ;;  %v311_v50 = vmax.f32 %v295_v37, 0.0  ;;  %v269_v51 = vmul.f32 %v254_v20, %v1479_v40  ;;  %v313_v54 = vmax.f32 %v297_v38, 0.0 }
  0xbe   : > { %v300_v52 = vadd.f32 %v1477_v39, %v268_v44  ;;  %v302_v53 = vadd.f32 %v1477_v39, %v270_v46  ;;  %v685_v55 = vmul.f32 %v1469_v23, %v1479_v40  ;;  %v713_v59 = vmax.f32 %v1481_v41, 0.0 }
  0xbf   : > { %v1497_v56 = vpop.permute.xlu0 %234  ;;  %v299_v57 = vadd.f32 %v1477_v39, %v267_v49  ;;  %v301_v58 = vadd.f32 %v1477_v39, %v269_v51  ;;  %v687_v60 = vmul.f32 %v1471_v24, %v1479_v40  ;;  %v715_v26 = vmax.f32 %v1483_v42, 0.0 }
  0xc0   : > { %v1504_v61 = vpop.permute.xlu1 %239  ;;  %v316_v62 = vmax.f32 %v300_v52, 0.0  ;;  %v318_v63 = vmax.f32 %v302_v53, 0.0  ;;  %v272_v0 = vmul.f32 %v250_v17, %v1497_v56  ;;  %v274_v1 = vmul.f32 %v258_v18, %v1497_v56 }
  0xc1   : > { %v315_v2 = vmax.f32 %v299_v57, 0.0  ;;  %v317_v3 = vmax.f32 %v301_v58, 0.0  ;;  %v276_v4 = vmul.f32 %v250_v17, %v1504_v61  ;;  %v278_v5 = vmul.f32 %v258_v18, %v1504_v61 }
  0xc2   : > { %v1124_v7 = vpack.c.bf16 %v316_v62, %v312_v45  ;;  %v1132_v8 = vpack.c.bf16 %v318_v63, %v314_v48  ;;  %v271_v11 = vmul.f32 %v246_v19, %v1497_v56  ;;  %v275_v12 = vmul.f32 %v246_v19, %v1504_v61 }
  0xc3   : > { %v1126_v13 = vpack.c.bf16 %v315_v2, %v311_v50  ;;  %v1134_v14 = vpack.c.bf16 %v317_v3, %v313_v54  ;;  %v273_v15 = vmul.f32 %v254_v20, %v1497_v56  ;;  %v277_v16 = vmul.f32 %v254_v20, %v1504_v61 }
  0xc4   : > { %1125 = vmatprep.subr.bf16.mxu0 %v1124_v7  ;;  %1133 = vmatprep.subr.bf16.mxu1 %v1132_v8  ;;  %v1514_v25 = vpop.permute.xlu0 %288  ;;  %v701_v17 = vadd.f32 %v685_v55, %v1477_v39  ;;  %v703_v18 = vadd.f32 %v687_v60, %v1477_v39  ;;  %v684_v27 = vmul.f32 %v1465_v21, %v1479_v40  ;;  %v712_v30 = vmax.f32 %v1485_v43, 0.0 }
  0xc5   : > { %v1521_v19 = vpop.permute.xlu1 %292  ;;  %1127 = vmatpush1.bf16.msra.mxu0 %v1126_v13  ;;  %1135 = vmatpush1.bf16.msra.mxu1 %v1134_v14  ;;  %v304_v28 = vadd.f32 %v1514_v25, %v272_v0  ;;  %v306_v20 = vadd.f32 %v1514_v25, %v274_v1  ;;  %v303_v29 = vadd.f32 %v1514_v25, %v271_v11  ;;  %v216_v0 = vld [vmem:[#allocation3] sm:$0xff] }
  0xc6   : > { %v308_v31 = vadd.f32 %v1521_v19, %v276_v4  ;;  %v310_v32 = vadd.f32 %v1521_v19, %v278_v5  ;;  %v307_v33 = vadd.f32 %v1521_v19, %v275_v12  ;;  %v305_v34 = vadd.f32 %v1514_v25, %v273_v15 }
  0xc7   : > { %v320_v35 = vmax.f32 %v304_v28, 0.0  ;;  %v322_v36 = vmax.f32 %v306_v20, 0.0  ;;  %v319_v37 = vmax.f32 %v303_v29, 0.0  ;;  %v309_v38 = vadd.f32 %v1521_v19, %v277_v16  ;;  %v217_v16 = vld [vmem:[#allocation3 + $0x8] sm:$0xff] }
  0xc8   : > { %v324_v41 = vmax.f32 %v308_v31, 0.0  ;;  %v326_v42 = vmax.f32 %v310_v32, 0.0  ;;  %v323_v44 = vmax.f32 %v307_v33, 0.0  ;;  %v321_v45 = vmax.f32 %v305_v34, 0.0 }
  0xc9   : > { %v325_v46 = vmax.f32 %v309_v38, 0.0  ;;  %v717_v48 = vmax.f32 %v701_v17, 0.0  ;;  %v719_v43 = vmax.f32 %v703_v18, 0.0  ;;  %v700_v49 = vadd.f32 %v684_v27, %v1477_v39  ;;  %v1595_v33 = vpop.permute.xlu0 %332 }
  0xca   : > { %v1128_v50 = vpack.c.bf16 %v324_v41, %v320_v35  ;;  %v1136_v51 = vpack.c.bf16 %v326_v42, %v322_v36  ;;  %v1130_v52 = vpack.c.bf16 %v323_v44, %v319_v37  ;;  %v686_v53 = vmul.f32 %v1467_v22, %v1479_v40  ;;  %v1591_v31 = vpop.permute.xlu1 %328 }
  0xcb   : > { %v1138_v54 = vpack.c.bf16 %v325_v46, %v321_v45  ;;  %v1140_v55 = vpack.c.bf16 %v717_v48, %v713_v59  ;;  %v1148_v57 = vpack.c.bf16 %v719_v43, %v715_v26  ;;  %v716_v58 = vmax.f32 %v700_v49, 0.0 }
  0xcc   : > { %1129 = vmatprep.subr.bf16.mxu0 %v1128_v50  ;;  %1137 = vmatprep.subr.bf16.mxu1 %v1136_v51  ;;  %v702_v60 = vadd.f32 %v686_v53, %v1477_v39  ;;  %v689_v62 = vmul.f32 %v1469_v23, %v1497_v56  ;;  %v693_v63 = vmul.f32 %v1469_v23, %v1504_v61  ;;  %v714_v40 = vmax.f32 %v1489_v47, 0.0 }
  0xcd   : > { %1131 = vmatpush1.bf16.msra.mxu0 %v1130_v52  ;;  %1139 = vmatpush1.bf16.msra.mxu1 %v1138_v54  ;;  %v1142_v1 = vpack.c.bf16 %v716_v58, %v712_v30  ;;  %v691_v59 = vmul.f32 %v1471_v24, %v1497_v56  ;;  %v695_v2 = vmul.f32 %v1471_v24, %v1504_v61  ;;  %v1327_v46 = vmov 1966171168  }
  0xce   : > { %1141 = vmatprep.subr.bf16.mxu0 %v1140_v55  ;;  %1149 = vmatprep.subr.bf16.mxu1 %v1148_v57  ;;  %v718_v39 = vmax.f32 %v702_v60, 0.0  ;;  %v705_v3 = vadd.f32 %v689_v62, %v1514_v25  ;;  %v709_v4 = vadd.f32 %v693_v63, %v1521_v19  ;;  %v688_v23 = vmul.f32 %v1465_v21, %v1497_v56  ;;  %v1593_v32 = vpop.permute.xlu1 %336  ;;  %v1603_v45 = vpop.permute.xlu0 %551 }
  0xcf   : > { %v707_v5 = vadd.f32 %v691_v59, %v1514_v25  ;;  %v711_v47 = vadd.f32 %v695_v2, %v1521_v19  ;;  %v692_v7 = vmul.f32 %v1465_v21, %v1504_v61  ;;  %v690_v24 = vmul.f32 %v1467_v22, %v1497_v56 }
  0xd0   : > { %1100 = vmatmul.mubr.msk.f32.vlgmr.msra.gmra.mrb[0].mxu0 %vm343_vm0, %v216_v0  ;;  %1104 = vmatmul.mubr.msk.f32.vlgmr.msra.gmra.mrb[0].mxu1 %vm343_vm0, %v216_v0  ;;  %v1150_v8 = vpack.c.bf16 %v718_v39, %v714_v40  ;;  %v721_v11 = vmax.f32 %v705_v3, 0.0  ;;  %v725_v12 = vmax.f32 %v709_v4, 0.0  ;;  %v704_v13 = vadd.f32 %v688_v23, %v1514_v25 }
  0xd1   : > { %1143 = vmatpush1.bf16.msra.mxu0 %v1142_v1  ;;  %v723_v14 = vmax.f32 %v707_v5, 0.0  ;;  %v727_v15 = vmax.f32 %v711_v47, 0.0  ;;  %426 = vmatprep.mubr.f32.mxu0 %v1324_v6  ;;  %v708_v21 = vadd.f32 %v692_v7, %v1521_v19  ;;  %v694_v56 = vmul.f32 %v1467_v22, %v1504_v61  ;;  %v218_v61 = vld [vmem:[#allocation3 + $0x10] sm:$0xff] }
  0xd2   : > { %1151 = vmatpush1.bf16.msra.mxu1 %v1150_v8  ;;  %v1144_v17 = vpack.c.bf16 %v725_v12, %v721_v11  ;;  %515 = vmatprep.mubr.f32.mxu1 %v1324_v6  ;;  %v720_v18 = vmax.f32 %v704_v13, 0.0  ;;  %v706_v26 = vadd.f32 %v690_v24, %v1514_v25  ;;  %v1597_v34 = vpop.permute.xlu1 %340  ;;  %v630_v48 = vunpack.c.l.s4 %v1327_v46 }
  0xd3   : > { %v1152_v27 = vpack.c.bf16 %v727_v15, %v723_v14  ;;  %v724_v28 = vmax.f32 %v708_v21, 0.0  ;;  %v710_v20 = vadd.f32 %v694_v56, %v1521_v19  ;;  %v219_v19 = vld [vmem:[#allocation3 + $0x18] sm:$0xff]  ;;  %v1611_v1 = vstv %s220_s12 }
  0xd4   : > { %1145 = vmatprep.subr.bf16.mxu0 %v1144_v17  ;;  %1101 = vmatmul.mubr.msk.f32.gmra.mrb[2].mxu0 %vm343_vm0, %v217_v16  ;;  %v722_v29 = vmax.f32 %v706_v26, 0.0  ;;  %v631_v40 = vunpack.c.0.s8 %v630_v48 }
  0xd5   : > { %1153 = vmatprep.subr.bf16.mxu1 %v1152_v27  ;;  %1105 = vmatmul.mubr.msk.f32.gmra.mrb[2].mxu1 %vm343_vm0, %v217_v16  ;;  %v1146_v30 = vpack.c.bf16 %v724_v28, %v720_v18  ;;  %v726_v22 = vmax.f32 %v710_v20, 0.0 }
  0xd6   : > { %432 = vmatprep.mubr.f32.mxu0 %v1324_v6  ;;  %521 = vmatprep.mubr.f32.mxu1 %v1324_v6 }
  0xd7   : > { %1147 = vmatpush1.bf16.msra.mxu0 %v1146_v30  ;;  %v1154_v25 = vpack.c.bf16 %v726_v22, %v722_v29  ;;  %v1605_v51 = vpop.permute.xlu1 %555 }
  0xd8   : > { %1102 = vmatmul.mubr.msk.f32.gmra.mrb[4].mxu0 %vm343_vm0, %v218_v61 }
  0xd9   : > { %1155 = vmatpush1.bf16.msra.mxu1 %v1154_v25  ;;  %438 = vmatprep.mubr.f32.mxu0 %v1324_v6 }
  0xda   : > { %1106 = vmatmul.mubr.msk.f32.gmra.mrb[4].mxu1 %vm343_vm0, %v218_v61 }
  0xdb   : > { %527 = vmatprep.mubr.f32.mxu1 %v1324_v6  ;;  %v1622_v15 = vpop.permute.xlu1 %559 }
  0xdc   : > { %1103 = vmatmul.mubr.msk.f32.gmra.mrb[6].mxu0 %vm343_vm0, %v219_v19 }
  0xdd   : > { %792 = vmatprep.mubr.f32.mxu0 %v1324_v6 }
  0xde   : > { %1107 = vmatmul.mubr.msk.f32.gmra.mrb[6].mxu1 %vm343_vm0, %v219_v19 }
  0xdf   : > { %881 = vmatprep.mubr.f32.mxu1 %v1324_v6 }
  0xe0   : > { %1109 = vmatmul.mubr.msk.f32.vlgmr.msra.gmra.mrb[8].mxu0 %vm343_vm0, %v216_v0 }
  0xe1   : > { %798 = vmatprep.mubr.f32.mxu0 %v1324_v6 }
  0xe2   : > { %1113 = vmatmul.mubr.msk.f32.vlgmr.msra.gmra.mrb[8].mxu1 %vm343_vm0, %v216_v0 }
  0xe3   : > { %887 = vmatprep.mubr.f32.mxu1 %v1324_v6 }
  0xe4   : > { %1110 = vmatmul.mubr.msk.f32.gmra.mrb[10].mxu0 %vm343_vm0, %v217_v16 }
  0xe5   : > { %804 = vmatprep.mubr.f32.mxu0 %v1324_v6 }
  0xe6   : > { %1114 = vmatmul.mubr.msk.f32.gmra.mrb[10].mxu1 %vm343_vm0, %v217_v16 }
  0xe7   : > { %893 = vmatprep.mubr.f32.mxu1 %v1324_v6 }
  0xe8   : > { %1111 = vmatmul.mubr.msk.f32.gmra.mrb[12].mxu0 %vm343_vm0, %v218_v61 }
  0xe9   : > { %810 = vmatprep.mubr.f32.mxu0 %v1324_v6 }
  0xea   : > { %1115 = vmatmul.mubr.msk.f32.gmra.mrb[12].mxu1 %vm343_vm0, %v218_v61 }
  0xeb   : > { %899 = vmatprep.mubr.f32.mxu1 %v1324_v6 }
  0xec   : > { %1112 = vmatmul.mubr.msk.f32.gmra.mrb[14].mxu0 %vm343_vm0, %v219_v19 }
  0xee   : > { %1116 = vmatmul.mubr.msk.f32.gmra.mrb[14].mxu1 %vm343_vm0, %v219_v19 }
 0x1a3   : > { %v422_v35 = vpop.f32.mrb[0].mxu0  ;;  %v511_v36 = vpop.f32.mrb[0].mxu1 }
 0x1a4   : > { %v423_v37 = vadd.f32 %v422_v35, %v1591_v31  ;;  %v512_v38 = vadd.f32 %v511_v36, %v1591_v31  ;;  %v424_v6 = vpop.f32.mrb[1].mxu0  ;;  %v513_v41 = vpop.f32.mrb[1].mxu1 }
 0x1a5   : > { %v425_v42 = vadd.f32 %v424_v6, %v1591_v31  ;;  %v514_v44 = vadd.f32 %v513_v41, %v1591_v31  ;;  %v1631_v6 = vpop.permute.xlu0 %563  ;;  %v1634_v41 = vsub.s32 %v631_v40, %v1456_v10 }
 0x1a6   : > { %v534_v43 = vmax.f32 %v423_v37, 0.0  ;;  %v536_v49 = vmax.f32 %v512_v38, 0.0 }
 0x1a7   : > { %v428_v50 = vpop.f32.mrb[2].mxu0  ;;  %v535_v52 = vmax.f32 %v425_v42, 0.0  ;;  %v537_v57 = vmax.f32 %v514_v44, 0.0 }
 0x1a8   : > { %v429_v53 = vadd.f32 %v428_v50, %v1595_v33  ;;  %v517_v54 = vpop.f32.mrb[2].mxu1  ;;  %v430_v55 = vpop.f32.mrb[3].mxu0  ;;  %v566_v39 = vmul.f32 %v1603_v45, %v534_v43  ;;  %v568_v3 = vmul.f32 %v1603_v45, %v536_v49 }
 0x1a9   : > { %v518_v58 = vadd.f32 %v517_v54, %v1595_v33  ;;  %v431_v60 = vadd.f32 %v430_v55, %v1595_v33  ;;  %v519_v62 = vpop.f32.mrb[3].mxu1  ;;  %v567_v5 = vmul.f32 %v1603_v45, %v535_v52  ;;  %v569_v8 = vmul.f32 %v1603_v45, %v537_v57 }
 0x1aa   : > { %v538_v63 = vmax.f32 %v429_v53, 0.0  ;;  %v520_v0 = vadd.f32 %v519_v62, %v1595_v33 }
 0x1ab   : > { %v540_v59 = vmax.f32 %v518_v58, 0.0  ;;  %v539_v2 = vmax.f32 %v431_v60, 0.0  ;;  %v434_v4 = vpop.f32.mrb[4].mxu0 }
 0x1ac   : > { %v541_v23 = vmax.f32 %v520_v0, 0.0  ;;  %v570_v47 = vmul.f32 %v1605_v51, %v538_v63  ;;  %v435_v7 = vadd.f32 %v434_v4, %v1593_v32  ;;  %v436_v24 = vpop.f32.mrb[5].mxu0 }
 0x1ad   : > { %v571_v11 = vmul.f32 %v1605_v51, %v539_v2  ;;  %v572_v12 = vmul.f32 %v1605_v51, %v540_v59  ;;  %v523_v13 = vpop.f32.mrb[4].mxu1  ;;  %v437_v14 = vadd.f32 %v436_v24, %v1593_v32 }
 0x1ae   : > { %v573_v16 = vmul.f32 %v1605_v51, %v541_v23  ;;  %v542_v21 = vmax.f32 %v435_v7, 0.0  ;;  %v524_v56 = vadd.f32 %v523_v13, %v1593_v32  ;;  %v525_v17 = vpop.f32.mrb[5].mxu1  ;;  %v582_v18 = vadd.f32 %v570_v47, %v566_v39 }
 0x1af   : > { %v543_v26 = vmax.f32 %v437_v14, 0.0  ;;  %v526_v27 = vadd.f32 %v525_v17, %v1593_v32  ;;  %v591_v28 = vadd.f32 %v571_v11, %v567_v5  ;;  %v600_v20 = vadd.f32 %v572_v12, %v568_v3  ;;  %v440_v29 = vpop.f32.mrb[6].mxu0 }
 0x1b0   : > { %v544_v30 = vmax.f32 %v524_v56, 0.0  ;;  %v574_v22 = vmul.f32 %v1622_v15, %v542_v21  ;;  %v609_v61 = vadd.f32 %v573_v16, %v569_v8  ;;  %v441_v25 = vadd.f32 %v440_v29, %v1597_v34  ;;  %v442_v19 = vpop.f32.mrb[7].mxu0 }
 0x1b1   : > { %v545_v35 = vmax.f32 %v526_v27, 0.0  ;;  %v575_v36 = vmul.f32 %v1622_v15, %v543_v26  ;;  %v529_v37 = vpop.f32.mrb[6].mxu1  ;;  %v443_v38 = vadd.f32 %v442_v19, %v1597_v34 }
 0x1b2   : > { %v576_v42 = vmul.f32 %v1622_v15, %v544_v30  ;;  %v583_v44 = vadd.f32 %v582_v18, %v574_v22  ;;  %v546_v46 = vmax.f32 %v441_v25, 0.0  ;;  %v530_v48 = vadd.f32 %v529_v37, %v1597_v34  ;;  %v531_v43 = vpop.f32.mrb[7].mxu1 }
 0x1b3   : > { %v577_v49 = vmul.f32 %v1622_v15, %v545_v35  ;;  %v592_v50 = vadd.f32 %v591_v28, %v575_v36  ;;  %v547_v52 = vmax.f32 %v443_v38, 0.0  ;;  %v532_v53 = vadd.f32 %v531_v43, %v1597_v34  ;;  %v794_v54 = vpop.f32.mrb[8].mxu0 }
 0x1b4   : > { %v601_v55 = vadd.f32 %v600_v20, %v576_v42  ;;  %v548_v57 = vmax.f32 %v530_v48, 0.0  ;;  %v795_v58 = vadd.f32 %v794_v54, %v1591_v31  ;;  %v578_v10 = vmul.f32 %v1631_v6, %v546_v46  ;;  %v796_v60 = vpop.f32.mrb[9].mxu0 }
 0x1b5   : > { %v610_v62 = vadd.f32 %v609_v61, %v577_v49  ;;  %v549_v63 = vmax.f32 %v532_v53, 0.0  ;;  %v883_v0 = vpop.f32.mrb[8].mxu1  ;;  %v579_v40 = vmul.f32 %v1631_v6, %v547_v52  ;;  %v797_v59 = vadd.f32 %v796_v60, %v1591_v31 }
 0x1b6   : > { %v906_v2 = vmax.f32 %v795_v58, 0.0  ;;  %v884_v39 = vadd.f32 %v883_v0, %v1591_v31  ;;  %v580_v3 = vmul.f32 %v1631_v6, %v548_v57  ;;  %v584_v4 = vadd.f32 %v583_v44, %v578_v10  ;;  %v885_v23 = vpop.f32.mrb[9].mxu1 }
 0x1b7   : > { %v581_v5 = vmul.f32 %v1631_v6, %v549_v63  ;;  %v593_v47 = vadd.f32 %v592_v50, %v579_v40  ;;  %v907_v7 = vmax.f32 %v797_v59, 0.0  ;;  %v886_v24 = vadd.f32 %v885_v23, %v1591_v31  ;;  %v800_v8 = vpop.f32.mrb[10].mxu0 }
 0x1b8   : > { %v922_v11 = vmul.f32 %v906_v2, %v1603_v45  ;;  %v908_v12 = vmax.f32 %v884_v39, 0.0  ;;  %v585_v13 = vrot.slane %v584_v4, 4  ;;  %v602_v14 = vadd.f32 %v601_v55, %v580_v3  ;;  %v802_v16 = vpop.f32.mrb[11].mxu0 }
 0x1b9   : > { %v594_v21 = vrot.slane %v593_v47, 4  ;;  %v611_v56 = vadd.f32 %v610_v62, %v581_v5  ;;  %v923_v17 = vmul.f32 %v907_v7, %v1603_v45  ;;  %v909_v18 = vmax.f32 %v886_v24, 0.0  ;;  %v889_v26 = vpop.f32.mrb[10].mxu1 }
 0x1ba   : > { %v924_v27 = vmul.f32 %v908_v12, %v1603_v45  ;;  %v586_v28 = vadd.f32 %v585_v13, %v584_v4  ;;  %v603_v20 = vrot.slane %v602_v14, 4  ;;  %v801_v29 = vadd.f32 %v800_v8, %v1595_v33  ;;  %v891_v31 = vpop.f32.mrb[11].mxu1 }
 0x1bb   : > { %v595_v30 = vadd.f32 %v594_v21, %v593_v47  ;;  %v612_v22 = vrot.slane %v611_v56, 4  ;;  %v925_v61 = vmul.f32 %v909_v18, %v1603_v45  ;;  %v890_v25 = vadd.f32 %v889_v26, %v1595_v33  ;;  %v806_v19 = vpop.f32.mrb[12].mxu0 }
 0x1bc   : > { %v587_v35 = vrot.slane %v586_v28, 2  ;;  %v604_v36 = vadd.f32 %v603_v20, %v602_v14  ;;  %v910_v37 = vmax.f32 %v801_v29, 0.0  ;;  %v803_v38 = vadd.f32 %v802_v16, %v1595_v33  ;;  %v808_v42 = vpop.f32.mrb[13].mxu0 }
 0x1bd   : > { %v596_v44 = vrot.slane %v595_v30, 2  ;;  %v613_v46 = vadd.f32 %v612_v22, %v611_v56  ;;  %v912_v48 = vmax.f32 %v890_v25, 0.0  ;;  %v892_v43 = vadd.f32 %v891_v31, %v1595_v33  ;;  %v895_v49 = vpop.f32.mrb[12].mxu1 }
 0x1be   : > { %v588_v50 = vadd.f32 %v587_v35, %v586_v28  ;;  %v605_v52 = vrot.slane %v604_v36, 2  ;;  %v926_v53 = vmul.f32 %v910_v37, %v1605_v51  ;;  %v911_v45 = vmax.f32 %v803_v38, 0.0  ;;  %v897_v54 = vpop.f32.mrb[13].mxu1 }
 0x1bf   : > { %v597_v55 = vadd.f32 %v596_v44, %v595_v30  ;;  %v614_v57 = vrot.slane %v613_v46, 2  ;;  %v928_v58 = vmul.f32 %v912_v48, %v1605_v51  ;;  %v913_v10 = vmax.f32 %v892_v43, 0.0  ;;  %v812_v60 = vpop.f32.mrb[14].mxu0 }
 0x1c0   : > { %v589_v62 = vrot.slane %v588_v50, 1  ;;  %v606_v63 = vadd.f32 %v605_v52, %v604_v36  ;;  %v938_v0 = vadd.f32 %v926_v53, %v922_v11  ;;  %v927_v40 = vmul.f32 %v911_v45, %v1605_v51  ;;  %v814_v59 = vpop.f32.mrb[15].mxu0 }
 0x1c1   : > { %v598_v33 = vrot.slane %v597_v55, 1  ;;  %v615_v2 = vadd.f32 %v614_v57, %v613_v46  ;;  %v956_v39 = vadd.f32 %v928_v58, %v924_v27  ;;  %v929_v3 = vmul.f32 %v913_v10, %v1605_v51  ;;  %v901_v4 = vpop.f32.mrb[14].mxu1 }
 0x1c2   : > { %v590_v23 = vadd.f32 %v589_v62, %v588_v50  ;;  %v607_v5 = vrot.slane %v606_v63, 1  ;;  %v947_v47 = vadd.f32 %v927_v40, %v923_v17  ;;  %v807_v7 = vadd.f32 %v806_v19, %v1593_v32  ;;  %v903_v24 = vpop.f32.mrb[15].mxu1 }
 0x1c3   : > { %v599_v8 = vadd.f32 %v598_v33, %v597_v55  ;;  %v616_v12 = vrot.slane %v615_v2, 1  ;;  %v965_v13 = vadd.f32 %v929_v3, %v925_v61  ;;  %v896_v11 = vadd.f32 %v895_v49, %v1593_v32 }
 0x1c4   : > { %v608_v14 = vadd.f32 %v607_v5, %v606_v63  ;;  %v914_v16 = vmax.f32 %v807_v7, 0.0  ;;  %v809_v21 = vadd.f32 %v808_v42, %v1593_v32  ;;  %v898_v56 = vadd.f32 %v897_v54, %v1593_v32 }
 0x1c5   : > { %v617_v18 = vadd.f32 %v616_v12, %v615_v2  ;;  %v916_v51 = vmax.f32 %v896_v11, 0.0  ;;  %v813_v26 = vadd.f32 %v812_v60, %v1597_v34  ;;  %v902_v17 = vadd.f32 %v901_v4, %v1597_v34 }
 0x1c6   : > { %v930_v27 = vmul.f32 %v914_v16, %v1622_v15  ;;  %v915_v28 = vmax.f32 %v809_v21, 0.0  ;;  %v917_v20 = vmax.f32 %v898_v56, 0.0  ;;  %v815_v29 = vadd.f32 %v814_v59, %v1597_v34 }
 0x1c7   : > { %v932_v31 = vmul.f32 %v916_v51, %v1622_v15  ;;  %v918_v30 = vmax.f32 %v813_v26, 0.0  ;;  %v920_v22 = vmax.f32 %v902_v17, 0.0  ;;  %v904_v61 = vadd.f32 %v903_v24, %v1597_v34 }
 0x1c8   : > { %v939_v25 = vadd.f32 %v938_v0, %v930_v27  ;;  %v931_v32 = vmul.f32 %v915_v28, %v1622_v15  ;;  %v933_v19 = vmul.f32 %v917_v20, %v1622_v15  ;;  %v919_v35 = vmax.f32 %v815_v29, 0.0 }
 0x1c9   : > { %v957_v36 = vadd.f32 %v956_v39, %v932_v31  ;;  %v934_v37 = vmul.f32 %v918_v30, %v1631_v6  ;;  %v936_v38 = vmul.f32 %v920_v22, %v1631_v6  ;;  %v921_v42 = vmax.f32 %v904_v61, 0.0 }
 0x1ca   : > { %v948_v44 = vadd.f32 %v947_v47, %v931_v32  ;;  %v966_v46 = vadd.f32 %v965_v13, %v933_v19  ;;  %v935_v48 = vmul.f32 %v919_v35, %v1631_v6  ;;  %v619_v43 = vadd.f32 %v1611_v1, %v590_v23 }
 0x1cb   : > { %v940_v34 = vadd.f32 %v939_v25, %v934_v37  ;;  %v958_v49 = vadd.f32 %v957_v36, %v936_v38  ;;  %v937_v50 = vmul.f32 %v921_v42, %v1631_v6  ;;  %v620_v15 = vadd.f32 %v1611_v1, %v599_v8 }
 0x1cc   : > { %v949_v52 = vadd.f32 %v948_v44, %v935_v48  ;;  %v621_v53 = vadd.f32 %v1611_v1, %v608_v14  ;;  %v622_v45 = vadd.f32 %v1611_v1, %v617_v18 }
 0x1cd   : > { %v941_v54 = vrot.slane %v940_v34, 4  ;;  %v959_v55 = vrot.slane %v958_v49, 4  ;;  %v967_v57 = vadd.f32 %v966_v46, %v937_v50  ;;  %v627_v58 = vcombine.low %v619_v43, %v620_v15 }
 0x1ce   : > { %v950_v10 = vrot.slane %v949_v52, 4  ;;  %v628_v60 = vcombine.low %v621_v53, %v622_v45 }
 0x1cf   : > { %v942_v62 = vadd.f32 %v941_v54, %v940_v34  ;;  %v960_v63 = vadd.f32 %v959_v55, %v958_v49  ;;  %v968_v0 = vrot.slane %v967_v57, 4  ;;  %v635_v6 = vrot.slane %v627_v58, %v1634_v41 }
 0x1d0   : > { %v951_v40 = vadd.f32 %v950_v10, %v949_v52  ;;  %v642_v59 = vrot.slane %v628_v60, %v1634_v41 }
 0x1d1   : > { %v943_v33 = vrot.slane %v942_v62, 2  ;;  %v961_v2 = vrot.slane %v960_v63, 2  ;;  %v969_v39 = vadd.f32 %v968_v0, %v967_v57 }
 0x1d2   : > { %v952_v3 = vrot.slane %v951_v40, 2  ;;  %v643_v4 = vcombine.low %v635_v6, %v642_v59 }
 0x1d3   : > { %v944_v23 = vadd.f32 %v943_v33, %v942_v62  ;;  %v962_v5 = vadd.f32 %v961_v2, %v960_v63  ;;  %v970_v47 = vrot.slane %v969_v39, 2 }
 0x1d4   : > { %v953_v24 = vadd.f32 %v952_v3, %v951_v40  ;;  %v650_v8 = vrot.slane %v643_v4, %v1634_v41 }
 0x1d5   : > { %v945_v12 = vrot.slane %v944_v23, 1  ;;  %v963_v13 = vrot.slane %v962_v5, 1  ;;  %v971_v11 = vadd.f32 %v970_v47, %v969_v39 }
 0x1d6   : > { %v954_v14 = vrot.slane %v953_v24, 1  ;;  %656 = vst.msk [vmem:[%s205_s15] sm:$0xf] %vm1686_vm1, %v650_v8 }
 0x1d7   : > { %v946_v16 = vadd.f32 %v945_v12, %v944_v23  ;;  %v964_v21 = vadd.f32 %v963_v13, %v962_v5  ;;  %v972_v56 = vrot.slane %v971_v11, 1 }
 0x1d8   : > { %v955_v18 = vadd.f32 %v954_v14, %v953_v24 }
 0x1d9   : > { %v974_v9 = vadd.f32 %v946_v16, %v1611_v1  ;;  %v976_v51 = vadd.f32 %v964_v21, %v1611_v1  ;;  %v973_v26 = vadd.f32 %v972_v56, %v971_v11 }
 0x1da   : > { %v975_v17 = vadd.f32 %v955_v18, %v1611_v1 }
 0x1db   : > { %v977_v27 = vadd.f32 %v973_v26, %v1611_v1 }
 0x1dc   : > { %v982_v28 = vcombine.low %v974_v9, %v975_v17 }
 0x1dd   : > { %v983_v20 = vcombine.low %v976_v51, %v977_v27 }
 0x1de   : > { %v990_v29 = vrot.slane %v982_v28, %v1634_v41 }
 0x1df   : > { %v997_v31 = vrot.slane %v983_v20, %v1634_v41 }
 0x1e1   : > { %v998_v30 = vcombine.low %v990_v29, %v997_v31 }
 0x1e3   : > { %v1005_v22 = vrot.slane %v998_v30, %v1634_v41 }
 0x1e5   : > { %1117 = vst.msk [vmem:[%s205_s15 + $0x4] sm:$0xf] %vm1686_vm1, %v1005_v22 }
 0x1e6   : > { %1264 = shalt.err (!%p1261_p7)
}
 0x1e7   : > { %s1265_s7 = scalar_lea.hbm %s1704_s29, 128  ;;  %s1269_s10 = scalar_lea.hbm %s1754_s4, 512 }
 0x1e8   : > { %p1266_p8 = scmp.ne.s32.totalorder %s1704_s29, %s1265_s7  ;;  %p1270_p1 = scmp.lt.u32.totalorder %s1704_s29, %s1754_s4 }
 0x1e9   : > { %p1271_p0 = scmp.lt.u32.totalorder %s1269_s10, %s1265_s7  ;;  %p1273_p6 = scmp.lt.u32.totalorder %s1265_s7, %s1704_s29 }
 0x1ea   : > { %p1267_p11 = pnand %p1266_p8, %p1767_p9 }
 0x1eb   : > { %p1272_p5 = por %p1271_p0, %p1270_p1 }
 0x1ec   : > { %p1268_p13 = pneg %p1267_p11 }
 0x1ed   : > { %p1274_p10 = por %p1273_p6, %p1272_p5 }
 0x1ef   : > { %p1275_p12 = pnand %p1274_p10, %p1268_p13 }
 0x1f1   : > { %1278 = shalt.err (!%p1275_p12)
}
 0x1f2   : > { %1160 = dma.vmem_to_hbm [thread:$0]  (%p1767_p9), %s1706_s21, 128, %s1704_s29, %s1010_s30  }
 0x1f3 PF: > { %p1172_p2 = scmp.ge.s32.totalorder %s1317_s20, 2  ;;  %s1036_s13 = sand.u32 1, %s1305_s17  }
 0x1f4   : > { %p1768_p3 = scmp.ne.s32.totalorder %s1759_s27, 0  ;;  %s1037_s14 = scalar_lea.sflag [#allocation5], %s1036_s13 }
 0x1f6   : > { %p1167_p4 = pnand %p1172_p2, %p1768_p3 }
 0x1f8   : > { %1300 = dma.done.wait (!%p1167_p4), %s1037_s14, 128  }
 0x1f9   : > { %1302 = vsyncadd (!%p1167_p4), %s1037_s14, 4294967168  ;;  %p16_p7 = scmp.ge.s32.totalorder %s1382_s22, 6   ;;  %s1769_s17 = smov %s1309_s18 }
 0x1fa   : > { %s1770_s18 = smov %s1313_s19  ;;  %s1771_s19 = smov %s1393_s25 }
 0x1fb   : > { %s1772_s20 = smov %s1382_s22  ;;  %18 = sbr.rel (!%p16_p7) target bundleno = 6 (0x6), region = 78 }
 0x202   :  { %1042 = vsyncpa [#allocation4], 1 }
 0x203   :  { %1044 = vsyncpa [#allocation4 + $0x1], 1 }
 0x204   :  { %1045 = vsyncpa [#allocation5], 1 }
 0x205   :  { %1047 = vsyncpa [#allocation5 + $0x1], 1 }

</bundles_post_ra>
